<compile_context>
chip_gen: v7x
topology: tpu7x:2x2x1
jax: 0.10.0
libtpu: 0.0.40
codegen_flags: <defaults>
</compile_context>

<pallas_src>
import functools

import jax
import jax.numpy as jnp
from jax.experimental import pallas as pl
from jax.experimental.pallas import tpu as pltpu


def _round_up(x, m):
    return ((x + m - 1) // m) * m


def _fit_rows(a, rows):
    n = a.shape[0]
    if n < rows:
        return jnp.pad(a, [(0, rows - n)] + [(0, 0)] * (a.ndim - 1))
    if n > rows:
        return a[:rows]
    return a


# --------------------------------------------------------------------------
# Stage A: fc + folded attention projections (row-tiled, one bf16 matmul)
# --------------------------------------------------------------------------
def _fc_kernel(x_ref, w_ref, feat_ref, el_ref, er_ref, *, hd, h):
    comb = jnp.dot(x_ref[...].astype(jnp.bfloat16), w_ref[...],
                   preferred_element_type=jnp.float32)          # (tr, H*D + 2H)
    feat_ref[...] = comb[:, :hd].astype(jnp.bfloat16)           # lane-dense bf16 feat
    el_ref[...] = comb[:, hd:hd + h]
    er_ref[...] = comb[:, hd + h:hd + 2 * h]
    # TODO(synk): emit el already transposed (H, N) to kill the tiny wrapper transpose.


# --------------------------------------------------------------------------
# Stage B: masked edge-softmax + aggregation
#   dst-tiled x src-tiled grid, online (flash-style) softmax over src blocks,
#   empty adjacency blocks skipped via scalar-prefetched nonzero table.
# --------------------------------------------------------------------------
def _attn_kernel(nz_ref, adj_ref, feat_ref, el_ref, er_ref, out_ref,
                 m_sc, l_sc, acc_sc, *,
                 num_heads, out_dim, negative_slope, apply_activation):
    i = pl.program_id(0)
    j = pl.program_id(1)
    n_src_t = pl.num_programs(1)

    @pl.when(j == 0)
    def _init():
        m_sc[...] = jnp.full_like(m_sc, -1e30)
        l_sc[...] = jnp.zeros_like(l_sc)
        acc_sc[...] = jnp.zeros_like(acc_sc)

    @pl.when(nz_ref[i * n_src_t + j] > 0)          # skip all-zero adjacency blocks
    def _compute():
        adj_blk = adj_ref[...]                      # (td, ts) bf16, dst-major
        mask = adj_blk > 0
        feat_blk = feat_ref[...]                    # (ts, H*D) bf16, lane-dense
        el_all = el_ref[...]                        # (H, ts) f32
        er_blk = er_ref[...]                        # (td, H) f32
        for h in range(num_heads):                  # small static loop over heads
            fh = feat_blk[:, h * out_dim:(h + 1) * out_dim]        # (ts, D) bf16
            e = er_blk[:, h:h + 1] + el_all[h:h + 1, :]            # (td, ts)
            e = jnp.maximum(e, negative_slope * e)                 # LeakyReLU
            e = jnp.where(mask, e, jnp.float32(-1e30))             # single mask select
            m_old = m_sc[h]                                        # (td, 1)
            m_new = jnp.maximum(m_old, jnp.max(e, axis=-1, keepdims=True))
            a = jnp.exp(m_old - m_new)
            p = jnp.exp(e - m_new)                                 # masked -> exactly 0
            l_sc[h] = a * l_sc[h] + jnp.sum(p, axis=-1, keepdims=True)
            acc_sc[h] = a * acc_sc[h] + jnp.dot(
                p.astype(jnp.bfloat16), fh, preferred_element_type=jnp.float32)
            m_sc[h] = m_new

    @pl.when(j == n_src_t - 1)
    def _finalize():
        outs = []
        for h in range(num_heads):
            inv = pl.reciprocal(jnp.maximum(l_sc[h], jnp.float32(1e-30)), approx=True)
            rst = acc_sc[h] * inv                                  # (td, D)
            if apply_activation:                                   # ELU
                rst = jnp.where(rst > 0, rst, jnp.exp(jnp.minimum(rst, 0.0)) - 1.0)
            outs.append(rst)
        out_ref[...] = jnp.concatenate(outs, axis=1)               # lane-dense (td, H*D)


# --------------------------------------------------------------------------
# Graph preprocessing (hoisted: done ONCE, reused by every layer)
# --------------------------------------------------------------------------
def prepare_graph(adj, *, tile_dst=256, tile_src=512):
    n = adj.shape[0]
    td = min(tile_dst, _round_up(n, 16))
    ts = min(tile_src, _round_up(n, 128))
    n_dst_pad = _round_up(n, td)
    n_src_pad = _round_up(n, ts)
    adj_t = jnp.pad(adj.T, ((0, n_dst_pad - n), (0, n_src_pad - n)))   # (dst, src)
    n_dst_t, n_src_t = n_dst_pad // td, n_src_pad // ts
    nz = (adj_t > 0).reshape(n_dst_t, td, n_src_t, ts).any(axis=(1, 3))
    return dict(adj_t=adj_t.astype(jnp.bfloat16),          # bf16 halves the N^2 stream
                nz=nz.astype(jnp.int32).reshape(-1),       # flat SMEM-friendly table
                n=n, td=td, ts=ts, n_dst_pad=n_dst_pad, n_src_pad=n_src_pad)


# --------------------------------------------------------------------------
# Layer wrapper
# --------------------------------------------------------------------------
def gat_layer(x, w, attn_l, attn_r, graph, *, num_heads, out_dim,
              negative_slope=0.2, apply_activation=True):
    n, td, ts = graph["n"], graph["td"], graph["ts"]
    n_dst_pad, n_src_pad = graph["n_dst_pad"], graph["n_src_pad"]
    h, d = num_heads, out_dim
    hd = h * d
    f_in = x.shape[1]

    # Fold el/er projections into the fc weight:  AL[h*D+d, h'] = attn_l[h,d]*(h==h')
    eye = jnp.eye(h, dtype=jnp.float32)
    al_mat = (attn_l[:, :, None] * eye[:, None, :]).reshape(hd, h)
    ar_mat = (attn_r[:, :, None] * eye[:, None, :]).reshape(hd, h)
    w_aug = jnp.concatenate([w, w @ al_mat, w @ ar_mat], axis=1).astype(jnp.bfloat16)

    # ---------------- Stage A: feat / el / er ----------------
    tr = ts                                       # rows padded same as Stage-B src axis
    x_p = _fit_rows(x, n_src_pad)
    feat, el, er = pl.pallas_call(
        functools.partial(_fc_kernel, hd=hd, h=h),
        grid=(n_src_pad // tr,),
        in_specs=[
            pl.BlockSpec((tr, f_in), lambda i: (i, 0)),
            pl.BlockSpec((f_in, hd + 2 * h), lambda i: (0, 0)),    # resident weight
        ],
        out_specs=(
            pl.BlockSpec((tr, hd), lambda i: (i, 0)),
            pl.BlockSpec((tr, h), lambda i: (i, 0)),
            pl.BlockSpec((tr, h), lambda i: (i, 0)),
        ),
        out_shape=(
            jax.ShapeDtypeStruct((n_src_pad, hd), jnp.bfloat16),
            jax.ShapeDtypeStruct((n_src_pad, h), jnp.float32),
            jax.ShapeDtypeStruct((n_src_pad, h), jnp.float32),
        ),
        compiler_params=pltpu.CompilerParams(dimension_semantics=("parallel",)),
    )(x_p, w_aug)

    # Tiny wrapper-side plumbing (O(N*H), negligible vs the N^2 adjacency stream):
    el_t = el.T                                    # (H, N_src) lane-dense rows
    er_d = _fit_rows(er, n_dst_pad)                # (N_dst, H)

    # ---------------- Stage B: attention + aggregation ----------------
    kernel = functools.partial(
        _attn_kernel, num_heads=h, out_dim=d,
        negative_slope=negative_slope, apply_activation=apply_activation)

    out = pl.pallas_call(
        kernel,
        grid_spec=pltpu.PrefetchScalarGridSpec(
            num_scalar_prefetch=1,
            grid=(n_dst_pad // td, n_src_pad // ts),
            in_specs=[
                pl.BlockSpec((td, ts), lambda i, j, nz: (i, j)),   # bf16 adjacency tile
                pl.BlockSpec((ts, hd), lambda i, j, nz: (j, 0)),   # bf16 feat src tile
                pl.BlockSpec((h, ts), lambda i, j, nz: (0, j)),    # el^T src tile
                pl.BlockSpec((td, h), lambda i, j, nz: (i, 0)),    # er dst tile
            ],
            out_specs=pl.BlockSpec((td, hd), lambda i, j, nz: (i, 0)),
            scratch_shapes=[
                pltpu.VMEM((h, td, 1), jnp.float32),   # running max m
                pltpu.VMEM((h, td, 1), jnp.float32),   # running sum l
                pltpu.VMEM((h, td, d), jnp.float32),   # running acc
            ],
        ),
        out_shape=jax.ShapeDtypeStruct((n_dst_pad, hd), jnp.float32),
        compiler_params=pltpu.CompilerParams(
            dimension_semantics=("parallel", "arbitrary"),
            vmem_limit_bytes=64 * 1024 * 1024,
        ),
    )(graph["nz"], graph["adj_t"], feat, el_t, er_d)
    return out[:n]


# --------------------------------------------------------------------------
# Model wrapper + pure-JAX reference
# --------------------------------------------------------------------------
def init_gat_params(key, num_layers, in_dim, num_hidden, heads):
    params = []
    fin = in_dim
    for l in range(num_layers):
        h = heads[l]
        kw, kl, kr, key = jax.random.split(key, 4)
        params.append({
            "w": 0.1 * jax.random.normal(kw, (fin, h * num_hidden), jnp.float32),
            "attn_l": 0.1 * jax.random.normal(kl, (h, num_hidden), jnp.float32),
            "attn_r": 0.1 * jax.random.normal(kr, (h, num_hidden), jnp.float32),
        })
        fin = num_hidden * h
    return params


def gat_forward(params, x, adj, num_hidden, heads, use_kernel=True):
    """Returns per-head outputs of the last layer: heads[-1] arrays of shape (N, num_hidden)."""
    h = x
    if use_kernel:
        graph = prepare_graph(adj)   # adj.T / bf16 / block-nonzero table: once, not per layer
    for l, p in enumerate(params):
        if use_kernel:
            h = gat_layer(h, p["w"], p["attn_l"], p["attn_r"], graph,
                          num_heads=heads[l], out_dim=num_hidden)
        else:
            h = _gat_layer_ref(h, p["w"], p["attn_l"], p["attn_r"], adj,
                               num_heads=heads[l], out_dim=num_hidden)
    return [h[:, i * num_hidden:(i + 1) * num_hidden] for i in range(heads[-1])]


def _gat_layer_ref(x, w, attn_l, attn_r, adj, *, num_heads, out_dim,
                   negative_slope=0.2):
    """Pure-JAX f32 reference for correctness checking."""
    feat = x @ w
    mask = adj > 0.0
    outs = []
    for h in range(num_heads):
        fh = feat[:, h * out_dim:(h + 1) * out_dim]
        el = jnp.sum(fh * attn_l[h:h + 1, :], axis=1, keepdims=True)
        er = jnp.sum(fh * attn_r[h:h + 1, :], axis=1, keepdims=True)
        e = el + er.T
        e = jnp.where(e > 0, e, negative_slope * e)
        e = jnp.where(mask, e, -1e30)
        m = jnp.max(e, axis=0, keepdims=True)
        p = jnp.where(mask, jnp.exp(e - m), 0.0)
        alpha = p / jnp.sum(p, axis=0, keepdims=True)
        rst = alpha.T @ fh
        rst = jnp.where(rst > 0, rst, jnp.exp(jnp.minimum(rst, 0.0)) - 1.0)
        outs.append(rst)
    return jnp.concatenate(outs, axis=1)


if __name__ == "__main__":
    key = jax.random.PRNGKey(0)
    N, in_dim, num_hidden = 256, 64, 32      # H*D = 128 -> lane-dense output
    num_layers = 2
    heads = [4, 4]

    kx, ka, kp = jax.random.split(key, 3)
    x = jax.random.normal(kx, (N, in_dim), jnp.float32)
    # synthetic graph: random sparse edges + self-loops (dense adjacency stands in for g)
    adj = (jax.random.uniform(ka, (N, N)) < 0.05).astype(jnp.float32)
    adj = jnp.maximum(adj, jnp.eye(N, dtype=jnp.float32))

    params = init_gat_params(kp, num_layers, in_dim, num_hidden, heads)

    out_heads = gat_forward(params, x, adj, num_hidden, heads, use_kernel=True)
    for o in out_heads:
        jax.block_until_ready(o)

    ref_heads = gat_forward(params, x, adj, num_hidden, heads, use_kernel=False)
    for o, r in zip(out_heads, ref_heads):
        assert o.shape == (N, num_hidden)
        # bf16 MXU inputs (f32 accumulation) -> loosened tolerances vs the f32 reference
        assert jnp.allclose(o, r, atol=2e-2, rtol=5e-2), "mismatch vs reference"

    print("KERNEL_OK")
</pallas_src>

<mosaic_0001>
module attributes {stable_mosaic.version = 11 : i64} {
  func.func @_fc_kernel(%arg0: i32, %arg1: memref<256x64xf32, #tpu.memory_space<vmem>>, %arg2: memref<64x136xbf16, #tpu.memory_space<vmem>>, %arg3: memref<256x128xbf16, #tpu.memory_space<vmem>>, %arg4: memref<256x4xf32, #tpu.memory_space<vmem>>, %arg5: memref<256x4xf32, #tpu.memory_space<vmem>>) attributes {dimension_semantics = [#tpu.dimension_semantics<parallel>], iteration_bounds = array<i64: 1>, scalar_prefetch = 0 : i64, scratch_operands = 0 : i64, tpu.core_type = #tpu.core_type<tc>, window_params = [{transform_indices = @transform_0, window_bounds = array<i64: 256, 64>}, {pipeline_mode = #tpu.pipeline_mode<synchronous>, transform_indices = @transform_1, window_bounds = array<i64: 64, 136>}, {transform_indices = @transform_2, window_bounds = array<i64: 256, 128>}, {transform_indices = @transform_3, window_bounds = array<i64: 256, 4>}, {transform_indices = @transform_4, window_bounds = array<i64: 256, 4>}]} {
    %c0 = arith.constant 0 : index
    %c0_0 = arith.constant 0 : index
    %0 = vector.load %arg1[%c0, %c0_0] : memref<256x64xf32, #tpu.memory_space<vmem>>, vector<256x64xf32>
    %1 = arith.truncf %0 : vector<256x64xf32> to vector<256x64xbf16>
    %c0_1 = arith.constant 0 : index
    %c0_2 = arith.constant 0 : index
    %2 = vector.load %arg2[%c0_1, %c0_2] : memref<64x136xbf16, #tpu.memory_space<vmem>>, vector<64x136xbf16>
    %cst = arith.constant dense<0.000000e+00> : vector<256x136xf32>
    %3 = tpu.matmul %1, %2, %cst {dimension_numbers = #tpu.dot_dimension_numbers<[1], [0], [0], [1], [0, 0, 1, 1], [], []>} : vector<256x64xbf16>, vector<64x136xbf16>, vector<256x136xf32> -> vector<256x136xf32>
    %4 = vector.extract_strided_slice %3 {offsets = [0, 0], sizes = [256, 128], strides = [1, 1]} : vector<256x136xf32> to vector<256x128xf32>
    %5 = arith.truncf %4 : vector<256x128xf32> to vector<256x128xbf16>
    %c0_3 = arith.constant 0 : index
    %c0_4 = arith.constant 0 : index
    %6 = vector.load %arg3[%c0_3, %c0_4] : memref<256x128xbf16, #tpu.memory_space<vmem>>, vector<256x128xbf16>
    tpu.vector_store %arg3[%c0_3, %c0_4], %5 {strides = array<i32>} : memref<256x128xbf16, #tpu.memory_space<vmem>>, vector<256x128xbf16>,
    %7 = vector.extract_strided_slice %3 {offsets = [0, 128], sizes = [256, 4], strides = [1, 1]} : vector<256x136xf32> to vector<256x4xf32>
    %c0_5 = arith.constant 0 : index
    %c0_6 = arith.constant 0 : index
    %8 = vector.load %arg4[%c0_5, %c0_6] : memref<256x4xf32, #tpu.memory_space<vmem>>, vector<256x4xf32>
    tpu.vector_store %arg4[%c0_5, %c0_6], %7 {strides = array<i32>} : memref<256x4xf32, #tpu.memory_space<vmem>>, vector<256x4xf32>,
    %9 = vector.extract_strided_slice %3 {offsets = [0, 132], sizes = [256, 4], strides = [1, 1]} : vector<256x136xf32> to vector<256x4xf32>
    %c0_7 = arith.constant 0 : index
    %c0_8 = arith.constant 0 : index
    %10 = vector.load %arg5[%c0_7, %c0_8] : memref<256x4xf32, #tpu.memory_space<vmem>>, vector<256x4xf32>
    tpu.vector_store %arg5[%c0_7, %c0_8], %9 {strides = array<i32>} : memref<256x4xf32, #tpu.memory_space<vmem>>, vector<256x4xf32>,
    return
  }
  func.func @transform_0(%arg0: i32) -> (i32, i32) {
    %c0_i32 = arith.constant 0 : i32
    %c0_i32_0 = arith.constant 0 : i32
    return %arg0, %c0_i32 : i32, i32
  }
  func.func @transform_1(%arg0: i32) -> (i32, i32) {
    %c0_i32 = arith.constant 0 : i32
    %c0_i32_0 = arith.constant 0 : i32
    %c0_i32_1 = arith.constant 0 : i32
    return %c0_i32, %c0_i32_0 : i32, i32
  }
  func.func @transform_2(%arg0: i32) -> (i32, i32) {
    %c0_i32 = arith.constant 0 : i32
    %c0_i32_0 = arith.constant 0 : i32
    return %arg0, %c0_i32 : i32, i32
  }
  func.func @transform_3(%arg0: i32) -> (i32, i32) {
    %c0_i32 = arith.constant 0 : i32
    %c0_i32_0 = arith.constant 0 : i32
    return %arg0, %c0_i32 : i32, i32
  }
  func.func @transform_4(%arg0: i32) -> (i32, i32) {
    %c0_i32 = arith.constant 0 : i32
    %c0_i32_0 = arith.constant 0 : i32
    return %arg0, %c0_i32 : i32, i32
  }
}

</mosaic_0001>

<bundles_post_ra>
// kernel: tpu_custom_call.1
= control target key start
LH: loop header
LB: loop body
LE: loop exit
PB: predicated region body
PF: predicated region fallthrough
CT: control target
= control target key end

     0   :  { %v963_v2 = vmov 0   ;;  %vm112_vm0 = vcmask 523264   ;;  %s1445_s0 = inlined_call_operand.vmem [shape: f32[256,64], index: 0, kind: input, shape index: {}]   ;;  %s1446_s1 = inlined_call_operand.vmem [shape: bf16[64,136], index: 1, kind: input, shape index: {}]   ;;  %s1447_s2 = inlined_call_operand.hbm [shape: bf16[256,128], index: 2, kind: output, shape index: {0}]   ;;  %s1448_s3 = inlined_call_operand.vmem [shape: f32[256,4], index: 3, kind: output, shape index: {1}]   ;;  %s1449_s4 = inlined_call_operand.vmem [shape: f32[256,4], index: 4, kind: output, shape index: {2}]  }
   0x1   :  { %v927_v0 = vld [vmem:[%s1446_s1 + $0x4] ss:$8 sps:$4 sm:$0xff]   ;;  %v929_v1 = vld [vmem:[%s1446_s1] ss:$8 sps:$4 sm:$0xff]   ;;  %193 = vmatprep.mubr.bf16.mxu0 %v963_v2  ;;  %273 = vmatprep.mubr.bf16.mxu1 %v963_v2  ;;  %v930_v3 = vld [vmem:[%s1446_s1 + $0x14] ss:$8 sps:$4 sm:$0xff]  }
   0x2   :  { %161 = vmatprep.subr.bf16.mxu0 %v927_v0  ;;  %914 = vmatprep.subr.bf16.mxu1 %v927_v0  ;;  %v932_v4 = vld [vmem:[%s1446_s1 + $0x10] ss:$8 sps:$4 sm:$0xff]   ;;  %v933_v5 = vld [vmem:[%s1446_s1 + $0x24] ss:$8 sps:$4 sm:$0xff]   ;;  %v935_v6 = vld [vmem:[%s1446_s1 + $0x20] ss:$8 sps:$4 sm:$0xff]  }
   0x3   :  { %162 = vmatpush1.bf16.msra.mxu0 %v929_v1  ;;  %918 = vmatpush1.bf16.msra.mxu1 %v929_v1  ;;  %v936_v7 = vld [vmem:[%s1446_s1 + $0x34] ss:$8 sps:$4 sm:$0xff]   ;;  %v938_v8 = vld [vmem:[%s1446_s1 + $0x30] ss:$8 sps:$4 sm:$0xff]   ;;  %v16_v9 = vld [vmem:[%s1445_s0] sm:$0xff] }
   0x4   :  { %163 = vmatprep.subr.bf16.mxu0 %v930_v3  ;;  %915 = vmatprep.subr.bf16.mxu1 %v930_v3  ;;  %v17_v10 = vld [vmem:[%s1445_s0 + $0x8] sm:$0xff]  ;;  %v32_v11 = vld [vmem:[%s1445_s0 + $0x80] sm:$0xff] }
   0x5   :  { %v33_v12 = vld [vmem:[%s1445_s0 + $0x88] sm:$0xff]  ;;  %v48_v13 = vpack.c.bf16 %v17_v10, %v16_v9 }
   0x6   :  { %v56_v14 = vpack.c.bf16 %v33_v12, %v32_v11 }
   0x7   :  { %164 = vmatpush1.bf16.msra.mxu0 %v932_v4  ;;  %919 = vmatpush1.bf16.msra.mxu1 %v932_v4 }
   0x8   :  { %165 = vmatprep.subr.bf16.mxu0 %v933_v5  ;;  %916 = vmatprep.subr.bf16.mxu1 %v933_v5 }
   0xb   :  { %166 = vmatpush1.bf16.msra.mxu0 %v935_v6  ;;  %920 = vmatpush1.bf16.msra.mxu1 %v935_v6 }
   0xc   :  { %167 = vmatprep.subr.bf16.mxu0 %v936_v7  ;;  %917 = vmatprep.subr.bf16.mxu1 %v936_v7 }
   0xf   :  { %168 = vmatpush1.bf16.msra.mxu0 %v938_v8  ;;  %921 = vmatpush1.bf16.msra.mxu1 %v938_v8 }
  0x10   :  { %10 = vsyncpa [#allocation3], 0  ;;  %v18_v15 = vld [vmem:[%s1445_s0 + $0x10] sm:$0xff]  ;;  %v19_v16 = vld [vmem:[%s1445_s0 + $0x18] sm:$0xff]  ;;  %vm514_vm1 = vcmask 31744   ;;  %s965_s16 = smov [#allocation2]  }
  0x11   :  { %v34_v17 = vld [vmem:[%s1445_s0 + $0x90] sm:$0xff]  ;;  %v35_v18 = vld [vmem:[%s1445_s0 + $0x98] sm:$0xff]  ;;  %v49_v19 = vpack.c.bf16 %v19_v16, %v18_v15  ;;  %v20_v21 = vld [vmem:[%s1445_s0 + $0x20] sm:$0xff]  ;;  %s712_s17 = sshll.u32 %s965_s16, 4  ;;  %s713_s17 = int_to_ptr.vmem [resolvable:$true] %s712_s17 }
  0x12   :  { %739 = vmatmul.mubr.msk.bf16.vlgmr.msra.gmra.mrb[0].mxu0 %vm112_vm0, %v48_v13  ;;  %747 = vmatmul.mubr.msk.bf16.vlgmr.msra.gmra.mrb[0].mxu1 %vm112_vm0, %v56_v14  ;;  %v57_v20 = vpack.c.bf16 %v35_v18, %v34_v17  ;;  %v21_v22 = vld [vmem:[%s1445_s0 + $0x28] sm:$0xff]  ;;  %v36_v23 = vld [vmem:[%s1445_s0 + $0xa0] sm:$0xff]  ;;  %v22_v27 = vld [vmem:[%s1445_s0 + $0x30] sm:$0xff]  ;;  %s939_s26 = scalar_lea.vmem %s713_s17, 2048  ;;  %p944_p1 = scmp.lt.s32.totalorder %s713_s17, %s713_s17 }
  0x13   :  { %203 = vmatprep.mubr.bf16.mxu0 %v963_v2  ;;  %283 = vmatprep.mubr.bf16.mxu1 %v963_v2  ;;  %v37_v24 = vld [vmem:[%s1445_s0 + $0xa8] sm:$0xff]  ;;  %v50_v25 = vpack.c.bf16 %v21_v22, %v20_v21  ;;  %v23_v28 = vld [vmem:[%s1445_s0 + $0x38] sm:$0xff]  ;;  %v38_v29 = vld [vmem:[%s1445_s0 + $0xb0] sm:$0xff]  ;;  %p940_p0 = scmp.ne.s32.totalorder %s713_s17, %s939_s26  ;;  %p945_p2 = scmp.lt.s32.totalorder %s939_s26, %s939_s26 }
  0x14   :  { %v58_v26 = vpack.c.bf16 %v37_v24, %v36_v23  ;;  %v39_v30 = vld [vmem:[%s1445_s0 + $0xb8] sm:$0xff]  ;;  %v51_v31 = vpack.c.bf16 %v23_v28, %v22_v27  ;;  %v24_v33 = vld [vmem:[%s1445_s0 + $0x40] sm:$0xff]  ;;  %v25_v34 = vld [vmem:[%s1445_s0 + $0x48] sm:$0xff] }
  0x15   :  { %v59_v32 = vpack.c.bf16 %v39_v30, %v38_v29  ;;  %v40_v35 = vld [vmem:[%s1445_s0 + $0xc0] sm:$0xff]  ;;  %v41_v36 = vld [vmem:[%s1445_s0 + $0xc8] sm:$0xff]  ;;  %v52_v37 = vpack.c.bf16 %v25_v34, %v24_v33  ;;  %v26_v39 = vld [vmem:[%s1445_s0 + $0x50] sm:$0xff]  ;;  %p946_p3 = por %p945_p2, %p944_p1 }
  0x16   :  { %v60_v38 = vpack.c.bf16 %v41_v36, %v40_v35  ;;  %v27_v40 = vld [vmem:[%s1445_s0 + $0x58] sm:$0xff]  ;;  %v42_v41 = vld [vmem:[%s1445_s0 + $0xd0] sm:$0xff]  ;;  %v28_v45 = vld [vmem:[%s1445_s0 + $0x60] sm:$0xff] }
  0x17   :  { %v43_v42 = vld [vmem:[%s1445_s0 + $0xd8] sm:$0xff]  ;;  %v53_v43 = vpack.c.bf16 %v27_v40, %v26_v39  ;;  %v29_v46 = vld [vmem:[%s1445_s0 + $0x68] sm:$0xff]  ;;  %v44_v47 = vld [vmem:[%s1445_s0 + $0xe0] sm:$0xff]  ;;  %p947_p4 = pnand %p946_p3, %p940_p0 }
  0x18   :  { %v61_v44 = vpack.c.bf16 %v43_v42, %v42_v41  ;;  %v45_v48 = vld [vmem:[%s1445_s0 + $0xe8] sm:$0xff]  ;;  %v54_v49 = vpack.c.bf16 %v29_v46, %v28_v45  ;;  %v30_v51 = vld [vmem:[%s1445_s0 + $0x70] sm:$0xff]  ;;  %v31_v52 = vld [vmem:[%s1445_s0 + $0x78] sm:$0xff] }
  0x19   :  { %v62_v50 = vpack.c.bf16 %v45_v48, %v44_v47  ;;  %v46_v53 = vld [vmem:[%s1445_s0 + $0xf0] sm:$0xff]  ;;  %v47_v54 = vld [vmem:[%s1445_s0 + $0xf8] sm:$0xff]  ;;  %v55_v55 = vpack.c.bf16 %v31_v52, %v30_v51  ;;  %s964_s0 = smov 124  }
  0x1a   :  { %740 = vmatmul.mubr.msk.bf16.gmra.mrb[4].mxu0 %vm112_vm0, %v49_v19  ;;  %748 = vmatmul.mubr.msk.bf16.gmra.mrb[4].mxu1 %vm112_vm0, %v57_v20  ;;  %v63_v56 = vpack.c.bf16 %v47_v54, %v46_v53 }
  0x1b   :  { %213 = vmatprep.mubr.bf16.mxu0 %v963_v2  ;;  %293 = vmatprep.mubr.bf16.mxu1 %v963_v2 }
  0x22   :  { %741 = vmatmul.mubr.msk.bf16.gmra.mrb[8].mxu0 %vm112_vm0, %v50_v25  ;;  %749 = vmatmul.mubr.msk.bf16.gmra.mrb[8].mxu1 %vm112_vm0, %v58_v26 }
  0x23   :  { %223 = vmatprep.mubr.bf16.mxu0 %v963_v2  ;;  %303 = vmatprep.mubr.bf16.mxu1 %v963_v2 }
  0x2a   :  { %742 = vmatmul.mubr.msk.bf16.gmra.mrb[12].mxu0 %vm112_vm0, %v51_v31  ;;  %750 = vmatmul.mubr.msk.bf16.gmra.mrb[12].mxu1 %vm112_vm0, %v59_v32 }
  0x2b   :  { %233 = vmatprep.mubr.bf16.mxu0 %v963_v2  ;;  %313 = vmatprep.mubr.bf16.mxu1 %v963_v2 }
  0x32   :  { %743 = vmatmul.mubr.msk.bf16.gmra.mrb[16].mxu0 %vm112_vm0, %v52_v37  ;;  %751 = vmatmul.mubr.msk.bf16.gmra.mrb[16].mxu1 %vm112_vm0, %v60_v38 }
  0x33   :  { %243 = vmatprep.mubr.bf16.mxu0 %v963_v2  ;;  %323 = vmatprep.mubr.bf16.mxu1 %v963_v2 }
  0x3a   :  { %744 = vmatmul.mubr.msk.bf16.gmra.mrb[20].mxu0 %vm112_vm0, %v53_v43  ;;  %752 = vmatmul.mubr.msk.bf16.gmra.mrb[20].mxu1 %vm112_vm0, %v61_v44 }
  0x3b   :  { %253 = vmatprep.mubr.bf16.mxu0 %v963_v2  ;;  %333 = vmatprep.mubr.bf16.mxu1 %v963_v2 }
  0x42   :  { %745 = vmatmul.mubr.msk.bf16.gmra.mrb[24].mxu0 %vm112_vm0, %v54_v49  ;;  %753 = vmatmul.mubr.msk.bf16.gmra.mrb[24].mxu1 %vm112_vm0, %v62_v50 }
  0x43   :  { %263 = vmatprep.mubr.bf16.mxu0 %v963_v2  ;;  %343 = vmatprep.mubr.bf16.mxu1 %v963_v2 }
  0x4a   :  { %746 = vmatmul.mubr.msk.bf16.gmra.mrb[28].mxu0 %vm112_vm0, %v55_v55  ;;  %754 = vmatmul.mubr.msk.bf16.gmra.mrb[28].mxu1 %vm112_vm0, %v63_v56 }
  0xe5   :  { %v195_v57 = vpop.f32.mrb[0].mxu0  ;;  %v275_v58 = vpop.f32.mrb[0].mxu1 }
  0xe6   :  { %v197_v59 = vpop.f32.mrb[1].mxu0  ;;  %v277_v60 = vpop.f32.mrb[1].mxu1 }
  0xe7   :  { %515 = vst.msk [vmem:[%s1448_s3] sm:$0xff] %vm514_vm1, %v197_v59  ;;  %531 = vst.msk [vmem:[%s1448_s3 + $0x80] sm:$0xff] %vm514_vm1, %v277_v60  ;;  %v279_v61 = vpop.f32.mrb[2].mxu1  ;;  %579 = vrot.lane.b32.xlu0 %v197_v59, %s964_s0  ;;  %v199_v62 = vpop.f32.mrb[2].mxu0 }
  0xe8   :  { %v862_v63 = vpack.c.bf16 %v279_v61, %v275_v58  ;;  %v822_v0 = vpack.c.bf16 %v199_v62, %v195_v57  ;;  %v201_v1 = vpop.f32.mrb[3].mxu0  ;;  %v281_v2 = vpop.f32.mrb[3].mxu1 }
  0xe9   :  { %516 = vst.msk [vmem:[%s1448_s3 + $0x8] sm:$0xff] %vm514_vm1, %v201_v1  ;;  %532 = vst.msk [vmem:[%s1448_s3 + $0x88] sm:$0xff] %vm514_vm1, %v281_v2  ;;  %613 = vrot.lane.b32.xlu1 %v281_v2, %s964_s0 }
  0xea   :  { %906 = vst [vmem:[#allocation2 + $0x40] sm:$0xff] %v862_v63   ;;  %823 = vst [vmem:[#allocation2] sm:$0xff] %v822_v0  }
  0xeb   :  { %611 = vrot.lane.b32.xlu0 %v277_v60, %s964_s0 }
  0xed   :  { %v205_v3 = vpop.f32.mrb[4].mxu0  ;;  %v285_v4 = vpop.f32.mrb[4].mxu1 }
  0xee   :  { %v207_v5 = vpop.f32.mrb[5].mxu0  ;;  %v287_v6 = vpop.f32.mrb[5].mxu1 }
  0xef   :  { %517 = vst.msk [vmem:[%s1448_s3 + $0x10] sm:$0xff] %vm514_vm1, %v207_v5  ;;  %581 = vrot.lane.b32.xlu0 %v201_v1, %s964_s0  ;;  %583 = vrot.lane.b32.xlu1 %v207_v5, %s964_s0  ;;  %v209_v7 = vpop.f32.mrb[6].mxu0  ;;  %533 = vst.msk [vmem:[%s1448_s3 + $0x90] sm:$0xff] %vm514_vm1, %v287_v6  ;;  %v289_v8 = vpop.f32.mrb[6].mxu1 }
  0xf0   :  { %v827_v9 = vpack.c.bf16 %v209_v7, %v205_v3  ;;  %v211_v10 = vpop.f32.mrb[7].mxu0  ;;  %v867_v11 = vpack.c.bf16 %v289_v8, %v285_v4  ;;  %v291_v12 = vpop.f32.mrb[7].mxu1 }
  0xf1   :  { %518 = vst.msk [vmem:[%s1448_s3 + $0x18] sm:$0xff] %vm514_vm1, %v211_v10  ;;  %534 = vst.msk [vmem:[%s1448_s3 + $0x98] sm:$0xff] %vm514_vm1, %v291_v12 }
  0xf2   :  { %899 = vst [vmem:[#allocation2 + $0x8] sm:$0xff] %v827_v9   ;;  %907 = vst [vmem:[#allocation2 + $0x48] sm:$0xff] %v867_v11  }
  0xf3   :  { %585 = vrot.lane.b32.xlu1 %v211_v10, %s964_s0  ;;  %615 = vrot.lane.b32.xlu0 %v287_v6, %s964_s0 }
  0xf5   :  { %v215_v13 = vpop.f32.mrb[8].mxu0  ;;  %v295_v14 = vpop.f32.mrb[8].mxu1 }
  0xf6   :  { %v217_v15 = vpop.f32.mrb[9].mxu0  ;;  %v297_v16 = vpop.f32.mrb[9].mxu1 }
  0xf7   :  { %519 = vst.msk [vmem:[%s1448_s3 + $0x20] sm:$0xff] %vm514_vm1, %v217_v15  ;;  %617 = vrot.lane.b32.xlu1 %v291_v12, %s964_s0  ;;  %v219_v17 = vpop.f32.mrb[10].mxu0  ;;  %587 = vrot.lane.b32.xlu0 %v217_v15, %s964_s0  ;;  %535 = vst.msk [vmem:[%s1448_s3 + $0xa0] sm:$0xff] %vm514_vm1, %v297_v16  ;;  %v299_v18 = vpop.f32.mrb[10].mxu1 }
  0xf8   :  { %v832_v19 = vpack.c.bf16 %v219_v17, %v215_v13  ;;  %v221_v20 = vpop.f32.mrb[11].mxu0  ;;  %v872_v21 = vpack.c.bf16 %v299_v18, %v295_v14  ;;  %v301_v22 = vpop.f32.mrb[11].mxu1 }
  0xf9   :  { %520 = vst.msk [vmem:[%s1448_s3 + $0x28] sm:$0xff] %vm514_vm1, %v221_v20  ;;  %536 = vst.msk [vmem:[%s1448_s3 + $0xa8] sm:$0xff] %vm514_vm1, %v301_v22 }
  0xfa   :  { %900 = vst [vmem:[#allocation2 + $0x10] sm:$0xff] %v832_v19   ;;  %908 = vst [vmem:[#allocation2 + $0x50] sm:$0xff] %v872_v21  }
  0xfb   :  { %589 = vrot.lane.b32.xlu1 %v221_v20, %s964_s0  ;;  %619 = vrot.lane.b32.xlu0 %v297_v16, %s964_s0 }
  0xfd   :  { %v225_v23 = vpop.f32.mrb[12].mxu0  ;;  %v305_v24 = vpop.f32.mrb[12].mxu1 }
  0xfe   :  { %v227_v25 = vpop.f32.mrb[13].mxu0  ;;  %v307_v26 = vpop.f32.mrb[13].mxu1 }
  0xff   :  { %521 = vst.msk [vmem:[%s1448_s3 + $0x30] sm:$0xff] %vm514_vm1, %v227_v25  ;;  %621 = vrot.lane.b32.xlu1 %v301_v22, %s964_s0  ;;  %v229_v27 = vpop.f32.mrb[14].mxu0  ;;  %591 = vrot.lane.b32.xlu0 %v227_v25, %s964_s0  ;;  %537 = vst.msk [vmem:[%s1448_s3 + $0xb0] sm:$0xff] %vm514_vm1, %v307_v26  ;;  %v309_v28 = vpop.f32.mrb[14].mxu1 }
 0x100   :  { %v837_v29 = vpack.c.bf16 %v229_v27, %v225_v23  ;;  %v231_v30 = vpop.f32.mrb[15].mxu0  ;;  %v877_v31 = vpack.c.bf16 %v309_v28, %v305_v24  ;;  %v311_v32 = vpop.f32.mrb[15].mxu1 }
 0x101   :  { %522 = vst.msk [vmem:[%s1448_s3 + $0x38] sm:$0xff] %vm514_vm1, %v231_v30  ;;  %538 = vst.msk [vmem:[%s1448_s3 + $0xb8] sm:$0xff] %vm514_vm1, %v311_v32 }
 0x102   :  { %901 = vst [vmem:[#allocation2 + $0x18] sm:$0xff] %v837_v29   ;;  %909 = vst [vmem:[#allocation2 + $0x58] sm:$0xff] %v877_v31  }
 0x103   :  { %593 = vrot.lane.b32.xlu1 %v231_v30, %s964_s0  ;;  %623 = vrot.lane.b32.xlu0 %v307_v26, %s964_s0 }
 0x105   :  { %v235_v33 = vpop.f32.mrb[16].mxu0  ;;  %v315_v34 = vpop.f32.mrb[16].mxu1 }
 0x106   :  { %v237_v35 = vpop.f32.mrb[17].mxu0  ;;  %v317_v36 = vpop.f32.mrb[17].mxu1 }
 0x107   :  { %523 = vst.msk [vmem:[%s1448_s3 + $0x40] sm:$0xff] %vm514_vm1, %v237_v35  ;;  %625 = vrot.lane.b32.xlu1 %v311_v32, %s964_s0  ;;  %v239_v37 = vpop.f32.mrb[18].mxu0  ;;  %595 = vrot.lane.b32.xlu0 %v237_v35, %s964_s0  ;;  %539 = vst.msk [vmem:[%s1448_s3 + $0xc0] sm:$0xff] %vm514_vm1, %v317_v36  ;;  %v319_v38 = vpop.f32.mrb[18].mxu1 }
 0x108   :  { %v842_v39 = vpack.c.bf16 %v239_v37, %v235_v33  ;;  %v241_v40 = vpop.f32.mrb[19].mxu0  ;;  %v882_v41 = vpack.c.bf16 %v319_v38, %v315_v34  ;;  %v321_v42 = vpop.f32.mrb[19].mxu1 }
 0x109   :  { %524 = vst.msk [vmem:[%s1448_s3 + $0x48] sm:$0xff] %vm514_vm1, %v241_v40  ;;  %540 = vst.msk [vmem:[%s1448_s3 + $0xc8] sm:$0xff] %vm514_vm1, %v321_v42 }
 0x10a   :  { %902 = vst [vmem:[#allocation2 + $0x20] sm:$0xff] %v842_v39   ;;  %910 = vst [vmem:[#allocation2 + $0x60] sm:$0xff] %v882_v41  }
 0x10b   :  { %597 = vrot.lane.b32.xlu1 %v241_v40, %s964_s0  ;;  %627 = vrot.lane.b32.xlu0 %v317_v36, %s964_s0 }
 0x10d   :  { %v245_v43 = vpop.f32.mrb[20].mxu0  ;;  %v325_v44 = vpop.f32.mrb[20].mxu1 }
 0x10e   :  { %v247_v45 = vpop.f32.mrb[21].mxu0  ;;  %v327_v46 = vpop.f32.mrb[21].mxu1 }
 0x10f   :  { %525 = vst.msk [vmem:[%s1448_s3 + $0x50] sm:$0xff] %vm514_vm1, %v247_v45  ;;  %629 = vrot.lane.b32.xlu1 %v321_v42, %s964_s0  ;;  %v249_v47 = vpop.f32.mrb[22].mxu0  ;;  %599 = vrot.lane.b32.xlu0 %v247_v45, %s964_s0  ;;  %541 = vst.msk [vmem:[%s1448_s3 + $0xd0] sm:$0xff] %vm514_vm1, %v327_v46  ;;  %v329_v48 = vpop.f32.mrb[22].mxu1 }
 0x110   :  { %v847_v49 = vpack.c.bf16 %v249_v47, %v245_v43  ;;  %v251_v50 = vpop.f32.mrb[23].mxu0  ;;  %v887_v51 = vpack.c.bf16 %v329_v48, %v325_v44  ;;  %v331_v52 = vpop.f32.mrb[23].mxu1 }
 0x111   :  { %526 = vst.msk [vmem:[%s1448_s3 + $0x58] sm:$0xff] %vm514_vm1, %v251_v50  ;;  %542 = vst.msk [vmem:[%s1448_s3 + $0xd8] sm:$0xff] %vm514_vm1, %v331_v52 }
 0x112   :  { %903 = vst [vmem:[#allocation2 + $0x28] sm:$0xff] %v847_v49   ;;  %911 = vst [vmem:[#allocation2 + $0x68] sm:$0xff] %v887_v51  }
 0x113   :  { %601 = vrot.lane.b32.xlu1 %v251_v50, %s964_s0  ;;  %631 = vrot.lane.b32.xlu0 %v327_v46, %s964_s0 }
 0x115   :  { %v255_v53 = vpop.f32.mrb[24].mxu0  ;;  %v335_v54 = vpop.f32.mrb[24].mxu1 }
 0x116   :  { %v257_v55 = vpop.f32.mrb[25].mxu0  ;;  %v337_v56 = vpop.f32.mrb[25].mxu1 }
 0x117   :  { %527 = vst.msk [vmem:[%s1448_s3 + $0x60] sm:$0xff] %vm514_vm1, %v257_v55  ;;  %633 = vrot.lane.b32.xlu1 %v331_v52, %s964_s0  ;;  %v259_v57 = vpop.f32.mrb[26].mxu0  ;;  %603 = vrot.lane.b32.xlu0 %v257_v55, %s964_s0  ;;  %543 = vst.msk [vmem:[%s1448_s3 + $0xe0] sm:$0xff] %vm514_vm1, %v337_v56  ;;  %v339_v58 = vpop.f32.mrb[26].mxu1 }
 0x118   :  { %v852_v59 = vpack.c.bf16 %v259_v57, %v255_v53  ;;  %v261_v60 = vpop.f32.mrb[27].mxu0  ;;  %v892_v61 = vpack.c.bf16 %v339_v58, %v335_v54  ;;  %v341_v62 = vpop.f32.mrb[27].mxu1 }
 0x119   :  { %528 = vst.msk [vmem:[%s1448_s3 + $0x68] sm:$0xff] %vm514_vm1, %v261_v60  ;;  %544 = vst.msk [vmem:[%s1448_s3 + $0xe8] sm:$0xff] %vm514_vm1, %v341_v62 }
 0x11a   :  { %904 = vst [vmem:[#allocation2 + $0x30] sm:$0xff] %v852_v59   ;;  %912 = vst [vmem:[#allocation2 + $0x70] sm:$0xff] %v892_v61  }
 0x11b   :  { %605 = vrot.lane.b32.xlu1 %v261_v60, %s964_s0  ;;  %635 = vrot.lane.b32.xlu0 %v337_v56, %s964_s0 }
 0x11d   :  { %v265_v63 = vpop.f32.mrb[28].mxu0  ;;  %v345_v0 = vpop.f32.mrb[28].mxu1 }
 0x11e   :  { %v267_v1 = vpop.f32.mrb[29].mxu0  ;;  %v347_v2 = vpop.f32.mrb[29].mxu1 }
 0x11f   :  { %529 = vst.msk [vmem:[%s1448_s3 + $0x70] sm:$0xff] %vm514_vm1, %v267_v1  ;;  %637 = vrot.lane.b32.xlu1 %v341_v62, %s964_s0  ;;  %v269_v3 = vpop.f32.mrb[30].mxu0  ;;  %607 = vrot.lane.b32.xlu0 %v267_v1, %s964_s0  ;;  %545 = vst.msk [vmem:[%s1448_s3 + $0xf0] sm:$0xff] %vm514_vm1, %v347_v2  ;;  %v349_v4 = vpop.f32.mrb[30].mxu1 }
 0x120   :  { %v857_v5 = vpack.c.bf16 %v269_v3, %v265_v63  ;;  %v271_v6 = vpop.f32.mrb[31].mxu0  ;;  %v897_v7 = vpack.c.bf16 %v349_v4, %v345_v0  ;;  %v351_v8 = vpop.f32.mrb[31].mxu1 }
 0x121   :  { %530 = vst.msk [vmem:[%s1448_s3 + $0x78] sm:$0xff] %vm514_vm1, %v271_v6  ;;  %546 = vst.msk [vmem:[%s1448_s3 + $0xf8] sm:$0xff] %vm514_vm1, %v351_v8 }
 0x122   :  { %905 = vst [vmem:[#allocation2 + $0x38] sm:$0xff] %v857_v5   ;;  %913 = vst [vmem:[#allocation2 + $0x78] sm:$0xff] %v897_v7  }
 0x123   :  { %609 = vrot.lane.b32.xlu1 %v271_v6, %s964_s0  ;;  %639 = vrot.lane.b32.xlu0 %v347_v2, %s964_s0 }
 0x124   :  { %950 = shalt.err (!%p947_p4)
}
 0x125   :  { %s951_s29 = scalar_lea.hbm %s1447_s2, 2048 }
 0x126   :  { %p952_p5 = scmp.ne.s32.totalorder %s1447_s2, %s951_s29  ;;  %p955_p6 = scmp.lt.u32.totalorder %s951_s29, %s1447_s2 }
 0x128   :  { %p957_p7 = pnand %p955_p6, %p952_p5 }
 0x12a   :  { %960 = shalt.err (!%p957_p7)
}
 0x12b   :  { %s966_s7 = smov 64   ;;  %s967_s8 = smov 4   ;;  %641 = vrot.lane.b32.xlu1 %v351_v8, %s964_s0 }
 0x12c   :  { %718 = dma.vmem_to_hbm [thread:$0]  %s713_s17, 2048, %s1447_s2, [#allocation3], %s966_s7, %s966_s7, %s967_s8  }
 0x159   :  { %v580_v9 = vpop.permute.xlu0 %579 }
 0x15a   :  { %675 = vst.msk [vmem:[%s1449_s4] sm:$0xff] %vm514_vm1, %v580_v9 }
 0x15b   :  { %v614_v10 = vpop.permute.xlu1 %613 }
 0x15c   :  { %692 = vst.msk [vmem:[%s1449_s4 + $0x88] sm:$0xff] %vm514_vm1, %v614_v10 }
 0x15d   :  { %v612_v11 = vpop.permute.xlu0 %611 }
 0x15e   :  { %691 = vst.msk [vmem:[%s1449_s4 + $0x80] sm:$0xff] %vm514_vm1, %v612_v11 }
 0x161   :  { %v582_v12 = vpop.permute.xlu0 %581  ;;  %v584_v13 = vpop.permute.xlu1 %583 }
 0x162   :  { %676 = vst.msk [vmem:[%s1449_s4 + $0x8] sm:$0xff] %vm514_vm1, %v582_v12  ;;  %677 = vst.msk [vmem:[%s1449_s4 + $0x10] sm:$0xff] %vm514_vm1, %v584_v13 }
 0x165   :  { %v586_v14 = vpop.permute.xlu1 %585  ;;  %v616_v15 = vpop.permute.xlu0 %615 }
 0x166   :  { %678 = vst.msk [vmem:[%s1449_s4 + $0x18] sm:$0xff] %vm514_vm1, %v586_v14  ;;  %693 = vst.msk [vmem:[%s1449_s4 + $0x90] sm:$0xff] %vm514_vm1, %v616_v15 }
 0x169   :  { %v618_v16 = vpop.permute.xlu1 %617  ;;  %v588_v17 = vpop.permute.xlu0 %587 }
 0x16a   :  { %694 = vst.msk [vmem:[%s1449_s4 + $0x98] sm:$0xff] %vm514_vm1, %v618_v16  ;;  %679 = vst.msk [vmem:[%s1449_s4 + $0x20] sm:$0xff] %vm514_vm1, %v588_v17 }
 0x16d   :  { %v590_v18 = vpop.permute.xlu1 %589  ;;  %v620_v19 = vpop.permute.xlu0 %619 }
 0x16e   :  { %680 = vst.msk [vmem:[%s1449_s4 + $0x28] sm:$0xff] %vm514_vm1, %v590_v18  ;;  %695 = vst.msk [vmem:[%s1449_s4 + $0xa0] sm:$0xff] %vm514_vm1, %v620_v19 }
 0x171   :  { %v622_v20 = vpop.permute.xlu1 %621  ;;  %v592_v21 = vpop.permute.xlu0 %591 }
 0x172   :  { %696 = vst.msk [vmem:[%s1449_s4 + $0xa8] sm:$0xff] %vm514_vm1, %v622_v20  ;;  %681 = vst.msk [vmem:[%s1449_s4 + $0x30] sm:$0xff] %vm514_vm1, %v592_v21 }
 0x175   :  { %v594_v22 = vpop.permute.xlu1 %593  ;;  %v624_v23 = vpop.permute.xlu0 %623 }
 0x176   :  { %682 = vst.msk [vmem:[%s1449_s4 + $0x38] sm:$0xff] %vm514_vm1, %v594_v22  ;;  %697 = vst.msk [vmem:[%s1449_s4 + $0xb0] sm:$0xff] %vm514_vm1, %v624_v23 }
 0x179   :  { %v626_v24 = vpop.permute.xlu1 %625  ;;  %v596_v25 = vpop.permute.xlu0 %595 }
 0x17a   :  { %698 = vst.msk [vmem:[%s1449_s4 + $0xb8] sm:$0xff] %vm514_vm1, %v626_v24  ;;  %683 = vst.msk [vmem:[%s1449_s4 + $0x40] sm:$0xff] %vm514_vm1, %v596_v25 }
 0x17d   :  { %v598_v26 = vpop.permute.xlu1 %597  ;;  %v628_v27 = vpop.permute.xlu0 %627 }
 0x17e   :  { %684 = vst.msk [vmem:[%s1449_s4 + $0x48] sm:$0xff] %vm514_vm1, %v598_v26  ;;  %699 = vst.msk [vmem:[%s1449_s4 + $0xc0] sm:$0xff] %vm514_vm1, %v628_v27 }
 0x181   :  { %v630_v28 = vpop.permute.xlu1 %629  ;;  %v600_v29 = vpop.permute.xlu0 %599 }
 0x182   :  { %700 = vst.msk [vmem:[%s1449_s4 + $0xc8] sm:$0xff] %vm514_vm1, %v630_v28  ;;  %685 = vst.msk [vmem:[%s1449_s4 + $0x50] sm:$0xff] %vm514_vm1, %v600_v29 }
 0x185   :  { %v602_v30 = vpop.permute.xlu1 %601  ;;  %v632_v31 = vpop.permute.xlu0 %631 }
 0x186   :  { %686 = vst.msk [vmem:[%s1449_s4 + $0x58] sm:$0xff] %vm514_vm1, %v602_v30  ;;  %701 = vst.msk [vmem:[%s1449_s4 + $0xd0] sm:$0xff] %vm514_vm1, %v632_v31 }
 0x189   :  { %v634_v32 = vpop.permute.xlu1 %633  ;;  %v604_v33 = vpop.permute.xlu0 %603 }
 0x18a   :  { %702 = vst.msk [vmem:[%s1449_s4 + $0xd8] sm:$0xff] %vm514_vm1, %v634_v32  ;;  %687 = vst.msk [vmem:[%s1449_s4 + $0x60] sm:$0xff] %vm514_vm1, %v604_v33 }
 0x18d   :  { %v606_v34 = vpop.permute.xlu1 %605  ;;  %v636_v35 = vpop.permute.xlu0 %635 }
 0x18e   :  { %688 = vst.msk [vmem:[%s1449_s4 + $0x68] sm:$0xff] %vm514_vm1, %v606_v34  ;;  %703 = vst.msk [vmem:[%s1449_s4 + $0xe0] sm:$0xff] %vm514_vm1, %v636_v35 }
 0x191   :  { %v638_v36 = vpop.permute.xlu1 %637  ;;  %v608_v37 = vpop.permute.xlu0 %607 }
 0x192   :  { %704 = vst.msk [vmem:[%s1449_s4 + $0xe8] sm:$0xff] %vm514_vm1, %v638_v36  ;;  %689 = vst.msk [vmem:[%s1449_s4 + $0x70] sm:$0xff] %vm514_vm1, %v608_v37 }
 0x195   :  { %v610_v38 = vpop.permute.xlu1 %609  ;;  %v640_v39 = vpop.permute.xlu0 %639 }
 0x196   :  { %690 = vst.msk [vmem:[%s1449_s4 + $0x78] sm:$0xff] %vm514_vm1, %v610_v38  ;;  %705 = vst.msk [vmem:[%s1449_s4 + $0xf0] sm:$0xff] %vm514_vm1, %v640_v39 }
 0x19d   :  { %v642_v40 = vpop.permute.xlu1 %641 }
 0x19e   :  { %706 = vst.msk [vmem:[%s1449_s4 + $0xf8] sm:$0xff] %vm514_vm1, %v642_v40 }
 0x19f   :  { %961 = dma.done.wait [#allocation3], 2048  }
 0x1a0   :  { %962 = vsyncadd [#allocation3], 4294965248 }
 0x1a1   :  { %730 = vsyncpa [#allocation3], 1 }

</bundles_post_ra>
